<compile_context>
chip_gen: v7x
topology: tpu7x:2x2x1
jax: 0.10.0
libtpu: 0.0.40
codegen_flags: <defaults>
</compile_context>

<pallas_src>
import functools
import math

import jax
import jax.numpy as jnp
from jax.experimental import pallas as pl
from jax.experimental.pallas import tpu as pltpu


# --------------------------------------------------------------------------- #
# Chip-aware configuration                                                    #
# --------------------------------------------------------------------------- #
@functools.lru_cache(maxsize=None)
def _tpu_config():
    """Best-effort chip query: (num_tensorcores, target_tile_bytes, vmem_cap)."""
    num_tc = 1
    vmem_cap = 64 << 20                      # conservative default (v7x per-TC)
    kind = ""
    try:
        kind = jax.devices()[0].device_kind.lower()
    except Exception:
        pass
    try:
        info = pltpu.get_tpu_info()
        cap = getattr(info, "vmem_capacity_bytes", None)
        if cap:
            vmem_cap = int(cap)
        for attr in ("num_tensorcores", "tensorcore_count",
                     "num_cores_per_chip", "cores_per_chip"):
            v = getattr(info, attr, None)
            if v:
                num_tc = int(v)
                break
    except Exception:
        pass
    if num_tc == 1 and ("7x" in kind or "v7" in kind):
        num_tc = 2                           # v7x: 2 TensorCores per chip
    num_tc = max(1, min(num_tc, 2))
    # Per-stream tile target: keep v5e modest (tight default scoped-VMEM,
    # lower HBM BW); bigger tiles elsewhere to amortize ~0.35us/step overhead.
    if "v5 lite" in kind or "v5e" in kind or "v5lite" in kind:
        target_tile = 1 << 20
    else:
        target_tile = 2 << 20
    return num_tc, target_tile, vmem_cap


def _slab_view(shape):
    """Copy-free lane-dense 2-D view (rows, lanes) of prod(shape) elements.

    If numel is a multiple of 128 we fold everything into a wide slab (full
    unmasked stores).  Otherwise fall back to the natural
    (prod(leading), last_dim) view: still zero wrapper copies, just possibly
    masked stores on the lane tail (far cheaper than pad/slice round-trips).
    """
    n = math.prod(shape) if shape else 1
    if n % 128 == 0:
        lanes = 128
        for w in (1024, 512, 256):
            if n % w == 0:
                lanes = w
                break
    else:
        lanes = shape[-1] if len(shape) >= 2 else n
    return n // lanes, lanes


def _choose_tm(rows, lanes, itemsize):
    """Rows per grid step: a sublane-quantum multiple, or == rows (one block)."""
    num_tc, target_tile, _ = _tpu_config()
    sub = 8 * max(1, 4 // int(itemsize))         # 8 f32 / 16 bf16 / 32 int8
    tm = max(sub, (target_tile // max(1, lanes * int(itemsize))) // sub * sub)
    if num_tc > 1 and rows >= 2 * num_tc * sub:
        # Only split the grid when a second TensorCore can actually use it.
        tm = min(tm, max(sub, (rows // (2 * num_tc)) // sub * sub))
    if rows <= tm:
        tm = rows                                # block == full dim
    return tm


def _vmem_limit(n_streams, tm, lanes, itemsize):
    """Explicit scoped-VMEM budget: double-buffered streams + headroom."""
    _, _, vmem_cap = _tpu_config()
    need = n_streams * 2 * tm * lanes * int(itemsize)
    return int(min(need + (16 << 20), (vmem_cap * 3) // 4))


# --------------------------------------------------------------------------- #
# Kernels (alpha / beta / v_th / v_reset baked in as compile-time constants)  #
# --------------------------------------------------------------------------- #
def _lif_step_kernel(x_ref, v_ref, i_ref, spk_ref, v_out_ref, i_out_ref,
                     *, alpha, beta, v_th, v_reset):
    """One elementwise LIF update on a [tm, lanes] tile (math in f32)."""
    x = x_ref[...].astype(jnp.float32)
    i_syn = alpha * i_ref[...].astype(jnp.float32) + x
    v_mem = beta * v_ref[...].astype(jnp.float32) + i_syn
    spiked = v_mem >= v_th
    spk_ref[...] = spiked.astype(spk_ref.dtype)
    v_out_ref[...] = jnp.where(spiked, v_reset, v_mem).astype(v_out_ref.dtype)
    i_out_ref[...] = i_syn.astype(i_out_ref.dtype)


def _lif_step_kernel_zero(x_ref, spk_ref, v_out_ref, i_out_ref,
                          *, v_th, v_reset):
    """state=None specialization: v_mem = i_syn = 0  =>  i' = x, v' = x."""
    x = x_ref[...].astype(jnp.float32)
    spiked = x >= v_th
    spk_ref[...] = spiked.astype(spk_ref.dtype)
    v_out_ref[...] = jnp.where(spiked, v_reset, x).astype(v_out_ref.dtype)
    i_out_ref[...] = x.astype(i_out_ref.dtype)


def _lif_seq_kernel(x_ref, v0_ref, i0_ref, spk_ref, v_ref, i_ref,
                    *, alpha, beta, v_th, v_reset):
    """Time-fused LIF: (v, i) live in the output blocks, resident across t."""
    @pl.when(pl.program_id(1) == 0)
    def _():
        v_ref[...] = v0_ref[...]
        i_ref[...] = i0_ref[...]
    x = x_ref[...].astype(jnp.float32)
    i_syn = alpha * i_ref[...].astype(jnp.float32) + x
    v_mem = beta * v_ref[...].astype(jnp.float32) + i_syn
    spiked = v_mem >= v_th
    spk_ref[...] = spiked.astype(spk_ref.dtype)
    v_ref[...] = jnp.where(spiked, v_reset, v_mem).astype(v_ref.dtype)
    i_ref[...] = i_syn.astype(i_ref.dtype)


def _lif_seq_kernel_zero(x_ref, spk_ref, v_ref, i_ref,
                         *, alpha, beta, v_th, v_reset):
    """Time-fused LIF with zero initial state (no state inputs at all)."""
    @pl.when(pl.program_id(1) == 0)
    def _():
        v_ref[...] = jnp.zeros(v_ref.shape, v_ref.dtype)
        i_ref[...] = jnp.zeros(i_ref.shape, i_ref.dtype)
    x = x_ref[...].astype(jnp.float32)
    i_syn = alpha * i_ref[...].astype(jnp.float32) + x
    v_mem = beta * v_ref[...].astype(jnp.float32) + i_syn
    spiked = v_mem >= v_th
    spk_ref[...] = spiked.astype(spk_ref.dtype)
    v_ref[...] = jnp.where(spiked, v_reset, v_mem).astype(v_ref.dtype)
    i_ref[...] = i_syn.astype(i_ref.dtype)


# --------------------------------------------------------------------------- #
# pallas_call wrappers                                                        #
# --------------------------------------------------------------------------- #
@functools.partial(jax.jit, static_argnames=("alpha", "beta", "v_th", "v_reset",
                                              "tm", "vmem_limit"))
def _lif_step(x2d, v2d, i2d, *, alpha, beta, v_th, v_reset, tm, vmem_limit):
    rows, lanes = x2d.shape
    spec = pl.BlockSpec((tm, lanes), lambda r: (r, 0))
    out = jax.ShapeDtypeStruct((rows, lanes), x2d.dtype)
    kernel = functools.partial(_lif_step_kernel, alpha=alpha, beta=beta,
                               v_th=v_th, v_reset=v_reset)
    return pl.pallas_call(
        kernel,
        out_shape=(out, out, out),
        grid_spec=pltpu.PrefetchScalarGridSpec(
            num_scalar_prefetch=0,
            grid=(pl.cdiv(rows, tm),),
            in_specs=[spec, spec, spec],         # x, v_mem, i_syn
            out_specs=[spec, spec, spec]),       # spikes, v_out, i_out
        compiler_params=pltpu.CompilerParams(
            dimension_semantics=("parallel",),
            vmem_limit_bytes=vmem_limit),
    )(x2d, v2d, i2d)


@functools.partial(jax.jit, static_argnames=("v_th", "v_reset",
                                              "tm", "vmem_limit"))
def _lif_step_zero(x2d, *, v_th, v_reset, tm, vmem_limit):
    rows, lanes = x2d.shape
    spec = pl.BlockSpec((tm, lanes), lambda r: (r, 0))
    out = jax.ShapeDtypeStruct((rows, lanes), x2d.dtype)
    kernel = functools.partial(_lif_step_kernel_zero, v_th=v_th, v_reset=v_reset)
    return pl.pallas_call(
        kernel,
        out_shape=(out, out, out),
        grid_spec=pltpu.PrefetchScalarGridSpec(
            num_scalar_prefetch=0,
            grid=(pl.cdiv(rows, tm),),
            in_specs=[spec],                     # x only
            out_specs=[spec, spec, spec]),
        compiler_params=pltpu.CompilerParams(
            dimension_semantics=("parallel",),
            vmem_limit_bytes=vmem_limit),
    )(x2d)


@functools.partial(jax.jit, static_argnames=("alpha", "beta", "v_th", "v_reset",
                                              "tm", "vmem_limit"))
def _lif_seq(x3d, v2d, i2d, *, alpha, beta, v_th, v_reset, tm, vmem_limit):
    T, rows, lanes = x3d.shape
    x_spec = pl.BlockSpec((None, tm, lanes), lambda r, t: (t, r, 0))
    st_spec = pl.BlockSpec((tm, lanes), lambda r, t: (r, 0))   # time-invariant
    spk_shape = jax.ShapeDtypeStruct((T, rows, lanes), x3d.dtype)
    st_shape = jax.ShapeDtypeStruct((rows, lanes), x3d.dtype)
    kernel = functools.partial(_lif_seq_kernel, alpha=alpha, beta=beta,
                               v_th=v_th, v_reset=v_reset)
    return pl.pallas_call(
        kernel,
        out_shape=(spk_shape, st_shape, st_shape),
        grid_spec=pltpu.PrefetchScalarGridSpec(
            num_scalar_prefetch=0,
            grid=(pl.cdiv(rows, tm), T),         # time innermost ("arbitrary")
            in_specs=[x_spec, st_spec, st_spec],
            out_specs=[x_spec, st_spec, st_spec]),
        compiler_params=pltpu.CompilerParams(
            dimension_semantics=("parallel", "arbitrary"),
            vmem_limit_bytes=vmem_limit),
    )(x3d, v2d, i2d)


@functools.partial(jax.jit, static_argnames=("alpha", "beta", "v_th", "v_reset",
                                              "tm", "vmem_limit"))
def _lif_seq_zero(x3d, *, alpha, beta, v_th, v_reset, tm, vmem_limit):
    T, rows, lanes = x3d.shape
    x_spec = pl.BlockSpec((None, tm, lanes), lambda r, t: (t, r, 0))
    st_spec = pl.BlockSpec((tm, lanes), lambda r, t: (r, 0))
    spk_shape = jax.ShapeDtypeStruct((T, rows, lanes), x3d.dtype)
    st_shape = jax.ShapeDtypeStruct((rows, lanes), x3d.dtype)
    kernel = functools.partial(_lif_seq_kernel_zero, alpha=alpha, beta=beta,
                               v_th=v_th, v_reset=v_reset)
    return pl.pallas_call(
        kernel,
        out_shape=(spk_shape, st_shape, st_shape),
        grid_spec=pltpu.PrefetchScalarGridSpec(
            num_scalar_prefetch=0,
            grid=(pl.cdiv(rows, tm), T),
            in_specs=[x_spec],
            out_specs=[x_spec, st_spec, st_spec]),
        compiler_params=pltpu.CompilerParams(
            dimension_semantics=("parallel", "arbitrary"),
            vmem_limit_bytes=vmem_limit),
    )(x3d)


# --------------------------------------------------------------------------- #
# Module wrapper                                                              #
# --------------------------------------------------------------------------- #
class LIFNeuronPallas:
    """JAX/Pallas port of the PyTorch LIFNeuron forward pass.

    __call__(x, state) reproduces the module's single-step forward exactly.
    forward_sequence(x_seq, state) is a time-fused variant (x_seq is [T, ...])
    equivalent to T chained single steps, but keeps (v_mem, i_syn) resident in
    VMEM across timesteps (2 HBM streams/step instead of 6).

    Math runs in f32 and results are stored in the I/O dtype; for bf16/fp8 I/O
    the spike decision near v_threshold may differ from a module that computes
    natively in the low-precision dtype.
    """

    def __init__(self, tau_mem=20.0, tau_syn=5.0, v_threshold=1.0, v_reset=0.0):
        self.beta = float(math.exp(-1.0 / tau_mem))
        self.alpha = float(math.exp(-1.0 / tau_syn))
        self.v_threshold = float(v_threshold)
        self.v_reset = float(v_reset)

    def __call__(self, x, state=None):
        shape = x.shape
        dtype = x.dtype
        itemsize = jnp.dtype(dtype).itemsize
        rows, lanes = _slab_view(shape)
        tm = _choose_tm(rows, lanes, itemsize)
        x2d = x.reshape(rows, lanes)                 # free (contiguous reshape)
        if state is None:
            spk, v, i = _lif_step_zero(
                x2d, v_th=self.v_threshold, v_reset=self.v_reset, tm=tm,
                vmem_limit=_vmem_limit(4, tm, lanes, itemsize))
        else:
            v0, i0 = state
            v2d = jnp.asarray(v0, dtype=dtype).reshape(rows, lanes)
            i2d = jnp.asarray(i0, dtype=dtype).reshape(rows, lanes)
            spk, v, i = _lif_step(
                x2d, v2d, i2d, alpha=self.alpha, beta=self.beta,
                v_th=self.v_threshold, v_reset=self.v_reset, tm=tm,
                vmem_limit=_vmem_limit(6, tm, lanes, itemsize))
        return spk.reshape(shape), (v.reshape(shape), i.reshape(shape))

    def forward_sequence(self, x_seq, state=None):
        """Time-fused LIF over x_seq[T, ...]; returns (spikes[T,...], state)."""
        T = x_seq.shape[0]
        step_shape = x_seq.shape[1:]
        dtype = x_seq.dtype
        itemsize = jnp.dtype(dtype).itemsize
        rows, lanes = _slab_view(step_shape)
        tm = _choose_tm(rows, lanes, itemsize)
        x3d = x_seq.reshape(T, rows, lanes)
        if state is None:
            spk, v, i = _lif_seq_zero(
                x3d, alpha=self.alpha, beta=self.beta,
                v_th=self.v_threshold, v_reset=self.v_reset, tm=tm,
                vmem_limit=_vmem_limit(4, tm, lanes, itemsize))
        else:
            v0, i0 = state
            v2d = jnp.asarray(v0, dtype=dtype).reshape(rows, lanes)
            i2d = jnp.asarray(i0, dtype=dtype).reshape(rows, lanes)
            spk, v, i = _lif_seq(
                x3d, v2d, i2d, alpha=self.alpha, beta=self.beta,
                v_th=self.v_threshold, v_reset=self.v_reset, tm=tm,
                vmem_limit=_vmem_limit(6, tm, lanes, itemsize))
        return (spk.reshape((T,) + step_shape),
                (v.reshape(step_shape), i.reshape(step_shape)))


# --------------------------------------------------------------------------- #
# Pure-JAX references (match the PyTorch forward exactly)                     #
# --------------------------------------------------------------------------- #
def _lif_ref(x, state, alpha, beta, v_th, v_reset):
    if state is None:
        v_mem = jnp.zeros_like(x)
        i_syn = jnp.zeros_like(x)
    else:
        v_mem, i_syn = state
    i_syn = alpha * i_syn + x
    v_mem = beta * v_mem + i_syn
    spikes = (v_mem >= v_th).astype(x.dtype)
    v_mem = v_mem * (1 - spikes) + v_reset * spikes
    return spikes, (v_mem, i_syn)


def _lif_seq_ref(x_seq, state, alpha, beta, v_th, v_reset):
    spikes = []
    for t in range(x_seq.shape[0]):
        s, state = _lif_ref(x_seq[t], state, alpha, beta, v_th, v_reset)
        spikes.append(s)
    return jnp.stack(spikes, axis=0), state


if __name__ == "__main__":
    key = jax.random.PRNGKey(0)
    k_x, k_v, k_i, k_y, k_s = jax.random.split(key, 5)

    neuron = LIFNeuronPallas(tau_mem=20.0, tau_syn=5.0,
                             v_threshold=1.0, v_reset=0.0)
    a, b = neuron.alpha, neuron.beta
    vt, vr = neuron.v_threshold, neuron.v_reset

    # Single-step forward, [batch, seq, hidden].
    B, S, H = 2, 8, 32
    x = jax.random.normal(k_x, (B, S, H), dtype=jnp.float32) * 1.5
    v0 = jax.random.normal(k_v, (B, S, H), dtype=jnp.float32) * 0.5
    i0 = jax.random.normal(k_i, (B, S, H), dtype=jnp.float32) * 0.5

    spk1, (v1, i1) = neuron(x, state=None)           # zero-state fast path
    spk2, (v2, i2) = neuron(x, state=(v0, i0))       # full 6-stream path

    # Non-128-aligned shape: natural-view path (no pad/slice copies).
    y = jax.random.normal(k_y, (3, 5, 257), dtype=jnp.float32)
    spk3, (v3, i3) = neuron(y, state=None)
    spk4, (v4, i4) = neuron(y, state=(0.3 * y, 0.1 * y))

    # Time-fused sequence, [T, batch, seq, hidden].
    Tn = 4
    xs = jax.random.normal(k_s, (Tn, B, S, H), dtype=jnp.float32) * 1.2
    sspk1, (sv1, si1) = neuron.forward_sequence(xs, state=None)
    sspk2, (sv2, si2) = neuron.forward_sequence(xs, state=(v0, i0))

    # Multi-step grid + partial trailing block, exercised directly.
    z = jax.random.normal(key, (40, 128), dtype=jnp.float32)
    zspk, zv, zi = _lif_step(z, 0.2 * z, 0.1 * z, alpha=a, beta=b,
                             v_th=vt, v_reset=vr, tm=16, vmem_limit=32 << 20)

    jax.block_until_ready((spk1, v1, i1, spk2, v2, i2, spk3, v3, i3,
                           spk4, v4, i4, sspk1, sv1, si1, sspk2, sv2, si2,
                           zspk, zv, zi))

    # Checks against the pure-JAX reference.
    r_spk1, (r_v1, r_i1) = _lif_ref(x, None, a, b, vt, vr)
    r_spk2, (r_v2, r_i2) = _lif_ref(x, (v0, i0), a, b, vt, vr)
    r_spk3, (r_v3, r_i3) = _lif_ref(y, None, a, b, vt, vr)
    r_spk4, (r_v4, r_i4) = _lif_ref(y, (0.3 * y, 0.1 * y), a, b, vt, vr)
    rs_spk1, (rs_v1, rs_i1) = _lif_seq_ref(xs, None, a, b, vt, vr)
    rs_spk2, (rs_v2, rs_i2) = _lif_seq_ref(xs, (v0, i0), a, b, vt, vr)
    r_zspk, (r_zv, r_zi) = _lif_ref(z, (0.2 * z, 0.1 * z), a, b, vt, vr)

    def check(got, want, atol=1e-6):
        assert got.shape == want.shape, (got.shape, want.shape)
        assert jnp.allclose(got, want, atol=atol), \
            float(jnp.max(jnp.abs(got - want)))

    for got, want in ((spk1, r_spk1), (v1, r_v1), (i1, r_i1),
                      (spk2, r_spk2), (v2, r_v2), (i2, r_i2),
                      (spk3, r_spk3), (v3, r_v3), (i3, r_i3),
                      (spk4, r_spk4), (v4, r_v4), (i4, r_i4),
                      (sspk1, rs_spk1), (sv1, rs_v1), (si1, rs_i1),
                      (sspk2, rs_spk2), (sv2, rs_v2), (si2, rs_i2),
                      (zspk, r_zspk), (zv, r_zv), (zi, r_zi)):
        check(got, want)

    print("KERNEL_OK")
</pallas_src>

<mosaic_0001>
module attributes {stable_mosaic.version = 11 : i64} {
  func.func @_lif_step_kernel_zero(%arg0: i32, %arg1: memref<1x512xf32, #tpu.memory_space<vmem>>, %arg2: memref<1x512xf32, #tpu.memory_space<vmem>>, %arg3: memref<1x512xf32, #tpu.memory_space<vmem>>, %arg4: memref<1x512xf32, #tpu.memory_space<vmem>>) attributes {dimension_semantics = [#tpu.dimension_semantics<parallel>], iteration_bounds = array<i64: 1>, scalar_prefetch = 0 : i64, scratch_operands = 0 : i64, tpu.core_type = #tpu.core_type<tc>, window_params = [{transform_indices = @transform_0, window_bounds = array<i64: 1, 512>}, {transform_indices = @transform_1, window_bounds = array<i64: 1, 512>}, {transform_indices = @transform_2, window_bounds = array<i64: 1, 512>}, {transform_indices = @transform_3, window_bounds = array<i64: 1, 512>}]} {
    %c0 = arith.constant 0 : index
    %c0_0 = arith.constant 0 : index
    %0 = vector.load %arg1[%c0, %c0_0] : memref<1x512xf32, #tpu.memory_space<vmem>>, vector<1x512xf32>
    %cst = arith.constant 1.000000e+00 : f32
    %1 = vector.broadcast %cst : f32 to vector<1x512xf32>
    %2 = arith.cmpf oge, %0, %1 : vector<1x512xf32>
    %3 = arith.extui %2 : vector<1x512xi1> to vector<1x512xi32>
    %4 = arith.sitofp %3 : vector<1x512xi32> to vector<1x512xf32>
    %c0_1 = arith.constant 0 : index
    %c0_2 = arith.constant 0 : index
    %5 = vector.load %arg2[%c0_1, %c0_2] : memref<1x512xf32, #tpu.memory_space<vmem>>, vector<1x512xf32>
    tpu.vector_store %arg2[%c0_1, %c0_2], %4 {strides = array<i32>} : memref<1x512xf32, #tpu.memory_space<vmem>>, vector<1x512xf32>,
    %cst_3 = arith.constant 0.000000e+00 : f32
    %6 = vector.broadcast %cst_3 : f32 to vector<1x512xf32>
    %7 = arith.select %2, %6, %0 : vector<1x512xi1>, vector<1x512xf32>
    %c0_4 = arith.constant 0 : index
    %c0_5 = arith.constant 0 : index
    %8 = vector.load %arg3[%c0_4, %c0_5] : memref<1x512xf32, #tpu.memory_space<vmem>>, vector<1x512xf32>
    tpu.vector_store %arg3[%c0_4, %c0_5], %7 {strides = array<i32>} : memref<1x512xf32, #tpu.memory_space<vmem>>, vector<1x512xf32>,
    %c0_6 = arith.constant 0 : index
    %c0_7 = arith.constant 0 : index
    %9 = vector.load %arg4[%c0_6, %c0_7] : memref<1x512xf32, #tpu.memory_space<vmem>>, vector<1x512xf32>
    tpu.vector_store %arg4[%c0_6, %c0_7], %0 {strides = array<i32>} : memref<1x512xf32, #tpu.memory_space<vmem>>, vector<1x512xf32>,
    return
  }
  func.func @transform_0(%arg0: i32) -> (i32, i32) {
    %c0_i32 = arith.constant 0 : i32
    %c0_i32_0 = arith.constant 0 : i32
    return %arg0, %c0_i32 : i32, i32
  }
  func.func @transform_1(%arg0: i32) -> (i32, i32) {
    %c0_i32 = arith.constant 0 : i32
    %c0_i32_0 = arith.constant 0 : i32
    return %arg0, %c0_i32 : i32, i32
  }
  func.func @transform_2(%arg0: i32) -> (i32, i32) {
    %c0_i32 = arith.constant 0 : i32
    %c0_i32_0 = arith.constant 0 : i32
    return %arg0, %c0_i32 : i32, i32
  }
  func.func @transform_3(%arg0: i32) -> (i32, i32) {
    %c0_i32 = arith.constant 0 : i32
    %c0_i32_0 = arith.constant 0 : i32
    return %arg0, %c0_i32 : i32, i32
  }
}

</mosaic_0001>

<bundles_post_ra>
// kernel: _lif_step_zero.1
= control target key start
LH: loop header
LB: loop body
LE: loop exit
PB: predicated region body
PF: predicated region fallthrough
CT: control target
= control target key end

     0   :  { %9 = vsyncpa [#allocation3], 0  ;;  %s276_s0 = inlined_call_operand.hbm [shape: f32[1,512], index: 0, kind: input, shape index: {}]   ;;  %s277_s1 = inlined_call_operand.hbm [shape: f32[1,512], index: 1, kind: output, shape index: {0}]   ;;  %s278_s2 = inlined_call_operand.hbm [shape: f32[1,512], index: 2, kind: output, shape index: {1}]   ;;  %s279_s3 = inlined_call_operand.hbm [shape: f32[1,512], index: 3, kind: output, shape index: {2}]  }
   0x1   :  { %10 = vsyncpa [#allocation4], 0 }
   0x2   :  { %11 = vsyncpa [#allocation7], 0  ;;  %s179_s12 = smov [#allocation2]   ;;  %s85_s16 = scalar_lea.hbm %s276_s0, 64 }
   0x3   :  { %s18_s13 = sshll.u32 %s179_s12, 4  ;;  %p86_p0 = scmp.ne.s32.totalorder %s276_s0, %s85_s16  ;;  %s19_s13 = int_to_ptr.vmem [resolvable:$true] %s18_s13 }
   0x4   :  { %p89_p1 = scmp.lt.u32.totalorder %s85_s16, %s276_s0 }
   0x6   :  { %p91_p2 = pnand %p89_p1, %p86_p0 }
   0x8   :  { %94 = shalt.err (!%p91_p2)
}
   0x9   :  { %s95_s21 = scalar_lea.vmem %s19_s13, 64  ;;  %p100_p4 = scmp.lt.s32.totalorder %s19_s13, %s19_s13 }
   0xa   :  { %p96_p3 = scmp.ne.s32.totalorder %s19_s13, %s95_s21  ;;  %p101_p5 = scmp.lt.s32.totalorder %s95_s21, %s95_s21 }
   0xc   :  { %p102_p6 = por %p101_p5, %p100_p4 }
   0xe   :  { %p103_p7 = pnand %p102_p6, %p96_p3 }
  0x10   :  { %106 = shalt.err (!%p103_p7)
}
  0x11   :  { %21 = dma.hbm_to_vmem [thread:$0]  %s276_s0, 64, %s19_s13, [#allocation3]  }
  0x12   :  { %173 = dma.done.wait [#allocation3], 64  }
  0x13   :  { %174 = vsyncadd [#allocation3], 4294967232  ;;  %v29_v0 = vlaneseq  ;;  %s180_s24 = smov [#allocation6]   ;;  %s181_s26 = smov [#allocation5]   ;;  %v25_v2 = vld [vmem:[#allocation2] sm:$0xf] }
  0x14   :  { %s53_s25 = sshll.u32 %s180_s24, 4  ;;  %s43_s27 = sshll.u32 %s181_s26, 4  ;;  %vm26_vm1 = vcmp.ge.f32.partialorder %v25_v2, 1.0  ;;  %v183_v4 = vmov 0.0   ;;  %s54_s25 = int_to_ptr.vmem [resolvable:$true] %s53_s25  ;;  %s222_s27 = int_to_ptr.vmem [resolvable:$true] %s43_s27 }
  0x15   :  { %vm216_vm0 = vcmp.lt.s32.totalorder %v29_v0, 512  ;;  %s182_s28 = smov [#allocation8]   ;;  %v34_v3 = vsel %vm26_vm1, 0.0, %v25_v2  ;;  %v79_v5 = vsel %vm26_vm1, 1.0, %v183_v4  ;;  %s107_s0 = scalar_lea.vmem %s54_s25, 64 }
  0x16   :  { %s63_s29 = sshll.u32 %s182_s28, 4  ;;  %36 = vst.msk [vmem:[#allocation8] sm:$0xf] %vm216_vm0, %v25_v2  ;;  %35 = vst.msk [vmem:[#allocation6] sm:$0xf] %vm216_vm0, %v34_v3  ;;  %p108_p8 = scmp.ne.s32.totalorder %s54_s25, %s107_s0  ;;  %s228_s29 = int_to_ptr.vmem [resolvable:$true] %s63_s29 }
  0x17   :  { %33 = vst.msk [vmem:[#allocation5] sm:$0xf] %vm216_vm0, %v79_v5  ;;  %p112_p9 = scmp.lt.s32.totalorder %s54_s25, %s54_s25  ;;  %p113_p10 = scmp.lt.s32.totalorder %s107_s0, %s107_s0 }
  0x19   :  { %p114_p11 = por %p113_p10, %p112_p9 }
  0x1b   :  { %p115_p12 = pnand %p114_p11, %p108_p8 }
  0x1d   :  { %118 = shalt.err (!%p115_p12)
}
  0x1e   :  { %s119_s5 = scalar_lea.hbm %s278_s2, 64 }
  0x1f   :  { %p120_p13 = scmp.ne.s32.totalorder %s278_s2, %s119_s5  ;;  %p123_p0 = scmp.lt.u32.totalorder %s119_s5, %s278_s2 }
  0x21   :  { %p125_p1 = pnand %p123_p0, %p120_p13 }
  0x23   :  { %128 = shalt.err (!%p125_p1)
}
  0x24   :  { %56 = dma.vmem_to_hbm [thread:$0]  %s54_s25, 64, %s278_s2, [#allocation7]  }
  0x25   :  { %s129_s12 = scalar_lea.vmem %s222_s27, 64  ;;  %p134_p3 = scmp.lt.s32.totalorder %s222_s27, %s222_s27 }
  0x26   :  { %p130_p2 = scmp.ne.s32.totalorder %s222_s27, %s129_s12  ;;  %p135_p4 = scmp.lt.s32.totalorder %s129_s12, %s129_s12 }
  0x28   :  { %p136_p5 = por %p135_p4, %p134_p3 }
  0x2a   :  { %p137_p6 = pnand %p136_p5, %p130_p2 }
  0x2c   :  { %140 = shalt.err (!%p137_p6)
}
  0x2d   :  { %s141_s15 = scalar_lea.hbm %s277_s1, 64 }
  0x2e   :  { %p142_p7 = scmp.ne.s32.totalorder %s277_s1, %s141_s15  ;;  %p145_p8 = scmp.lt.u32.totalorder %s141_s15, %s277_s1 }
  0x30   :  { %p147_p9 = pnand %p145_p8, %p142_p7 }
  0x32   :  { %150 = shalt.err (!%p147_p9)
}
  0x33   :  { %46 = dma.vmem_to_hbm [thread:$0]  %s222_s27, 64, %s277_s1, [#allocation4]  }
  0x34   :  { %s151_s21 = scalar_lea.vmem %s228_s29, 64  ;;  %p156_p11 = scmp.lt.s32.totalorder %s228_s29, %s228_s29 }
  0x35   :  { %p152_p10 = scmp.ne.s32.totalorder %s228_s29, %s151_s21  ;;  %p157_p12 = scmp.lt.s32.totalorder %s151_s21, %s151_s21 }
  0x37   :  { %p158_p13 = por %p157_p12, %p156_p11 }
  0x39   :  { %p159_p0 = pnand %p158_p13, %p152_p10 }
  0x3b   :  { %162 = shalt.err (!%p159_p0)
}
  0x3c   :  { %s163_s24 = scalar_lea.hbm %s279_s3, 64 }
  0x3d   :  { %p164_p1 = scmp.ne.s32.totalorder %s279_s3, %s163_s24  ;;  %p167_p2 = scmp.lt.u32.totalorder %s163_s24, %s279_s3 }
  0x3f   :  { %p169_p3 = pnand %p167_p2, %p164_p1 }
  0x41   :  { %172 = shalt.err (!%p169_p3)
}
  0x42   :  { %66 = dma.vmem_to_hbm [thread:$0]  %s228_s29, 64, %s279_s3, [#allocation7]  }
  0x43   :  { %175 = dma.done.wait [#allocation4], 64  }
  0x44   :  { %176 = vsyncadd [#allocation4], 4294967232 }
  0x45   :  { %177 = dma.done.wait [#allocation7], 128  }
  0x46   :  { %178 = vsyncadd [#allocation7], 4294967168 }
  0x47   :  { %76 = vsyncpa [#allocation3], 1 }
  0x48   :  { %77 = vsyncpa [#allocation4], 1 }
  0x49   :  { %78 = vsyncpa [#allocation7], 1 }

</bundles_post_ra>
